<compile_context>
chip_gen: v5e
topology: v5e:2x2
jax: 0.10.0
libtpu: 0.0.40
codegen_flags: <defaults>
</compile_context>

<pallas_src>
import jax
import jax.numpy as jnp
from jax.experimental import pallas as pl
from jax.experimental.pallas import tpu as pltpu

LANES = 128
CHUNK_ROWS = 1024          # inner compute chunk: (1024,128) f32 temps ~512 KiB
MAX_TILE_ROWS = 8192       # DMA block: (8192,128) f32 = 4 MiB/input/buffer
VMEM_LIMIT_BYTES = 32 * 1024 * 1024   # <= physical VMEM on v5e/v6e/v7x


def _num_core_splits():
    """2-way core split only on multi-TensorCore chips (v7x); 1 elsewhere."""
    try:
        kind = jax.devices()[0].device_kind.lower()
    except Exception:
        return 1
    return 2 if ("v7" in kind or "7x" in kind) else 1


def _make_kernel(tile_rows, chunk_rows, rows, steps_per_core, need_mask):
    """Build the reduction kernel with static tiling parameters baked in."""
    n_chunks = tile_rows // chunk_rows
    assert n_chunks * chunk_rows == tile_rows

    if chunk_rows % 8 == 0:
        groups = chunk_rows // 8

        def fold(x):
            # (chunk_rows,128) -> (8,128): vreg-granular elementwise adds.
            return jnp.sum(x.reshape(groups, 8, LANES), axis=0)
    else:
        # Tiny-input fallback (rows < 8 or not a multiple of 8): accumulator
        # is chunk-shaped; perf is irrelevant at this size.
        def fold(x):
            return x

    def kernel(out_ref, tgt_ref, sum_ref, cnt_ref, acc_sum, acc_cnt):
        c = pl.program_id(0)   # core-split index (CORE_PARALLEL on v7x)
        i = pl.program_id(1)   # streaming step ("arbitrary", carries scratch)

        @pl.when(i == 0)
        def _():
            acc_sum[...] = jnp.zeros_like(acc_sum)
            acc_cnt[...] = jnp.zeros_like(acc_cnt)

        block_row0 = (c * steps_per_core + i) * tile_rows

        def accum_chunk(j, masked):
            r0 = pl.multiple_of(j * chunk_rows, chunk_rows)
            o = out_ref[pl.ds(r0, chunk_rows), :].astype(jnp.float32)
            t = tgt_ref[pl.ds(r0, chunk_rows), :].astype(jnp.float32)
            valid = jnp.logical_not(jnp.isnan(t))
            if masked:
                row_ids = (block_row0 + r0) + jax.lax.broadcasted_iota(
                    jnp.int32, (chunk_rows, LANES), 0)
                valid = jnp.logical_and(valid, row_ids < rows)
            diff = jnp.where(valid, o - t, jnp.float32(0.0))
            acc_sum[...] = acc_sum[...] + fold(diff * diff)
            # Count in f32 (exact up to ~2^24 per accumulator slot, i.e. tens
            # of GiB of input per core split) to avoid int32 wrap.
            acc_cnt[...] = acc_cnt[...] + fold(valid.astype(jnp.float32))

        def accum_block(masked):
            if n_chunks == 1:
                accum_chunk(0, masked)
            else:
                @pl.loop(0, n_chunks)
                def _(j):
                    accum_chunk(j, masked)

        if not need_mask:
            accum_block(False)
        else:
            block_end = block_row0 + tile_rows

            @pl.when(block_end <= rows)
            def _():
                accum_block(False)          # fast path: no iota/mask cost

            @pl.when(jnp.logical_and(block_end > rows, block_row0 < rows))
            def _():
                accum_block(True)           # only the overhanging block pays
            # Blocks with block_row0 >= rows (clamped, fully out of range due
            # to an imbalanced core split) are skipped entirely.

        # One cross-lane/sublane reduction per core, at the last step only.
        @pl.when(i == pl.num_programs(1) - 1)
        def _():
            sum_ref[...] = jnp.sum(acc_sum[...], keepdims=True)
            cnt_ref[...] = jnp.sum(acc_cnt[...], keepdims=True)

    return kernel


def mse_loss(output, target):
    """NaN-masked MSE: mean((output[m] - target[m])**2), m = ~isnan(target).

    Returns a float32 scalar; NaN if target is all-NaN (matches the PyTorch
    module's behavior).
    """
    assert output.shape == target.shape

    if not jnp.issubdtype(output.dtype, jnp.floating):
        output = output.astype(jnp.float32)
    if not jnp.issubdtype(target.dtype, jnp.floating):
        target = target.astype(jnp.float32)

    n = output.size
    if n == 0:
        return jnp.array(jnp.nan, dtype=jnp.float32)

    out_flat = jnp.ravel(output)
    tgt_flat = jnp.ravel(target)

    rows = n // LANES
    tail = n - rows * LANES

    # <=127-element tail handled in plain JAX (no full-array pad/copy).
    if tail:
        o_t = out_flat[rows * LANES:].astype(jnp.float32)
        t_t = tgt_flat[rows * LANES:].astype(jnp.float32)
        v_t = jnp.logical_not(jnp.isnan(t_t))
        tail_sum = jnp.sum(jnp.where(v_t, (o_t - t_t) ** 2, jnp.float32(0.0)))
        tail_cnt = jnp.sum(v_t.astype(jnp.float32))
    else:
        tail_sum = jnp.float32(0.0)
        tail_cnt = jnp.float32(0.0)

    if rows == 0:
        # Whole input fits in the tail; nothing for the kernel to do.
        return (tail_sum / tail_cnt).astype(jnp.float32)

    if tail:
        out2d = out_flat[: rows * LANES].reshape(rows, LANES)
        tgt2d = tgt_flat[: rows * LANES].reshape(rows, LANES)
    else:
        out2d = out_flat.reshape(rows, LANES)   # free reshape, no copy
        tgt2d = tgt_flat.reshape(rows, LANES)

    # Tiling: block is a multiple of the compute chunk so the in-kernel chunk
    # loop divides it evenly; small inputs use a single full-extent block.
    if rows <= CHUNK_ROWS:
        tile_rows = rows
        chunk_rows = rows
    else:
        tile_rows = min(MAX_TILE_ROWS,
                        ((rows + CHUNK_ROWS - 1) // CHUNK_ROWS) * CHUNK_ROWS)
        chunk_rows = CHUNK_ROWS

    num_blocks = pl.cdiv(rows, tile_rows)
    splits = min(_num_core_splits(), num_blocks)
    steps_per_core = pl.cdiv(num_blocks, splits)
    need_mask = splits * steps_per_core * tile_rows != rows

    acc_shape = (8, LANES) if chunk_rows % 8 == 0 else (chunk_rows, LANES)

    def in_index_map(c, i):
        # Clamp so no block is addressed entirely out of bounds; such logical
        # blocks are skipped in-kernel.
        return (jnp.minimum(c * steps_per_core + i, num_blocks - 1), 0)

    if splits > 1:
        # v7x: actually shard the leading axis across both TensorCores.
        dims = (getattr(pltpu, "CORE_PARALLEL", "parallel"),
                getattr(pltpu, "ARBITRARY", "arbitrary"))
    else:
        dims = ("arbitrary", "arbitrary")

    kernel = _make_kernel(tile_rows, chunk_rows, rows, steps_per_core, need_mask)

    sums, cnts = pl.pallas_call(
        kernel,
        out_shape=(
            jax.ShapeDtypeStruct((splits, 1), jnp.float32),
            jax.ShapeDtypeStruct((splits, 1), jnp.float32),
        ),
        grid_spec=pltpu.PrefetchScalarGridSpec(
            num_scalar_prefetch=0,
            grid=(splits, steps_per_core),
            in_specs=[
                pl.BlockSpec((tile_rows, LANES), in_index_map),
                pl.BlockSpec((tile_rows, LANES), in_index_map),
            ],
            out_specs=[
                pl.BlockSpec((1, 1), lambda c, i: (c, 0)),
                pl.BlockSpec((1, 1), lambda c, i: (c, 0)),
            ],
            scratch_shapes=[
                pltpu.VMEM(acc_shape, jnp.float32),
                pltpu.VMEM(acc_shape, jnp.float32),
            ],
        ),
        compiler_params=pltpu.CompilerParams(
            dimension_semantics=dims,
            vmem_limit_bytes=VMEM_LIMIT_BYTES,
        ),
        cost_estimate=pl.CostEstimate(
            flops=5 * rows * LANES,
            transcendentals=0,
            bytes_accessed=rows * LANES * (out2d.dtype.itemsize
                                           + tgt2d.dtype.itemsize) + 8 * splits,
        ),
    )(out2d, tgt2d)

    total_sum = jnp.sum(sums) + tail_sum
    total_cnt = jnp.sum(cnts) + tail_cnt
    # 0.0 / 0.0 -> NaN reproduces the "mask.sum() == 0" branch.
    return (total_sum / total_cnt).astype(jnp.float32)


def _reference(output, target):
    valid = jnp.logical_not(jnp.isnan(target))
    num = jnp.sum(jnp.where(valid, (output - target) ** 2, 0.0).astype(jnp.float32))
    den = jnp.sum(valid.astype(jnp.float32))
    return num / den


if __name__ == "__main__":
    key = jax.random.PRNGKey(0)
    k1, k2, k3, k4, k5, k6 = jax.random.split(key, 6)

    # Main small NCHW example, lane-aligned (2*4*16*16 = 2048 elements).
    B, C, H, W = 2, 4, 16, 16
    output = jax.random.normal(k1, (B, C, H, W), dtype=jnp.float32)
    target = jax.random.normal(k2, (B, C, H, W), dtype=jnp.float32)
    nan_mask = jax.random.bernoulli(k3, p=0.25, shape=(B, C, H, W))
    target = jnp.where(nan_mask, jnp.nan, target)

    loss = mse_loss(output, target)
    jax.block_until_ready(loss)
    ref = _reference(output, target)
    assert jnp.allclose(loss, ref, rtol=1e-6, atol=1e-6), (loss, ref)

    # All-NaN target -> NaN branch.
    loss_nan = mse_loss(output, jnp.full_like(target, jnp.nan))
    jax.block_until_ready(loss_nan)
    assert jnp.isnan(loss_nan)

    # Odd, non-lane-aligned shape (exercises the JAX tail + tiny-tile path).
    shp = (3, 5, 7, 11)
    o2 = jax.random.normal(k4, shp, dtype=jnp.float32)
    t2 = jax.random.normal(k5, shp, dtype=jnp.float32)
    t2 = jnp.where(jax.random.bernoulli(k6, p=0.3, shape=shp), jnp.nan, t2)
    l2 = mse_loss(o2, t2)
    jax.block_until_ready(l2)
    r2 = _reference(o2, t2)
    assert jnp.allclose(l2, r2, rtol=1e-5, atol=1e-6), (l2, r2)

    # Mid-size shape (2*4*192*192 = 294912 elems): single overhanging block,
    # masked accumulate path.
    shp3 = (2, 4, 192, 192)
    o3 = jax.random.normal(k1, shp3, dtype=jnp.float32)
    t3 = jax.random.normal(k2, shp3, dtype=jnp.float32)
    t3 = jnp.where(jax.random.bernoulli(k3, p=0.1, shape=shp3), jnp.nan, t3)
    l3 = mse_loss(o3, t3)
    jax.block_until_ready(l3)
    r3 = _reference(o3, t3)
    assert jnp.allclose(l3, r3, rtol=1e-5, atol=1e-6), (l3, r3)

    # Multi-block streaming path (2*4*384*512 = 1572864 elems, rows=12288):
    # block 0 unmasked fast path, block 1 masked overhang, chunked inner loop.
    shp4 = (2, 4, 384, 512)
    o4 = jax.random.normal(k4, shp4, dtype=jnp.float32)
    t4 = jax.random.normal(k5, shp4, dtype=jnp.float32)
    t4 = jnp.where(jax.random.bernoulli(k6, p=0.2, shape=shp4), jnp.nan, t4)
    l4 = mse_loss(o4, t4)
    jax.block_until_ready(l4)
    r4 = _reference(o4, t4)
    assert jnp.allclose(l4, r4, rtol=1e-5, atol=1e-6), (l4, r4)

    print("KERNEL_OK")
</pallas_src>

<mosaic_0001>
module attributes {stable_mosaic.version = 11 : i64} {
  func.func @kernel(%arg0: i32, %arg1: i32, %arg2: memref<16x128xf32, #tpu.memory_space<vmem>>, %arg3: memref<16x128xf32, #tpu.memory_space<vmem>>, %arg4: memref<1x1xf32, #tpu.memory_space<vmem>>, %arg5: memref<1x1xf32, #tpu.memory_space<vmem>>, %arg6: memref<8x128xf32, #tpu.memory_space<vmem>>, %arg7: memref<8x128xf32, #tpu.memory_space<vmem>>) attributes {dimension_semantics = [#tpu.dimension_semantics<arbitrary>, #tpu.dimension_semantics<arbitrary>], iteration_bounds = array<i64: 1, 1>, scalar_prefetch = 0 : i64, scratch_operands = 2 : i64, tpu.core_type = #tpu.core_type<tc>, window_params = [{transform_indices = @transform_0, window_bounds = array<i64: 16, 128>}, {transform_indices = @transform_1, window_bounds = array<i64: 16, 128>}, {transform_indices = @transform_2, window_bounds = array<i64: 1, 1>}, {transform_indices = @transform_3, window_bounds = array<i64: 1, 1>}]} {
    %c0_i32 = arith.constant 0 : i32
    %0 = arith.cmpi eq, %arg1, %c0_i32 : i32
    %1 = arith.extui %0 : i1 to i32
    %c0_i32_0 = arith.constant 0 : i32
    %2 = arith.cmpi ne, %1, %c0_i32_0 : i32
    scf.if %2 {
      %cst_16 = arith.constant 0.000000e+00 : f32
      %29 = vector.broadcast %cst_16 : f32 to vector<8x128xf32>
      %c0_17 = arith.constant 0 : index
      %c0_18 = arith.constant 0 : index
      %30 = vector.load %arg6[%c0_17, %c0_18] : memref<8x128xf32, #tpu.memory_space<vmem>>, vector<8x128xf32>
      tpu.vector_store %arg6[%c0_17, %c0_18], %29 {strides = array<i32>} : memref<8x128xf32, #tpu.memory_space<vmem>>, vector<8x128xf32>,
      %cst_19 = arith.constant 0.000000e+00 : f32
      %31 = vector.broadcast %cst_19 : f32 to vector<8x128xf32>
      %c0_20 = arith.constant 0 : index
      %c0_21 = arith.constant 0 : index
      %32 = vector.load %arg7[%c0_20, %c0_21] : memref<8x128xf32, #tpu.memory_space<vmem>>, vector<8x128xf32>
      tpu.vector_store %arg7[%c0_20, %c0_21], %31 {strides = array<i32>} : memref<8x128xf32, #tpu.memory_space<vmem>>, vector<8x128xf32>,
    } else {
    }
    %c0_i32_1 = arith.constant 0 : i32
    %3 = tpu.assume_multiple %c0_i32_1, 16 : i32
    %4 = arith.index_cast %3 : i32 to index
    %c0 = arith.constant 0 : index
    %5 = vector.load %arg2[%4, %c0] : memref<16x128xf32, #tpu.memory_space<vmem>>, vector<16x128xf32>
    %6 = arith.index_cast %3 : i32 to index
    %c0_2 = arith.constant 0 : index
    %7 = vector.load %arg3[%6, %c0_2] : memref<16x128xf32, #tpu.memory_space<vmem>>, vector<16x128xf32>
    %8 = arith.cmpf one, %7, %7 : vector<16x128xf32>
    %cst = arith.constant dense<true> : vector<16x128xi1>
    %9 = arith.xori %8, %cst : vector<16x128xi1>
    %10 = arith.subf %5, %7 : vector<16x128xf32>
    %cst_3 = arith.constant 0.000000e+00 : f32
    %11 = vector.broadcast %cst_3 : f32 to vector<16x128xf32>
    %12 = arith.select %9, %10, %11 : vector<16x128xi1>, vector<16x128xf32>
    %c0_4 = arith.constant 0 : index
    %c0_5 = arith.constant 0 : index
    %13 = vector.load %arg6[%c0_4, %c0_5] : memref<8x128xf32, #tpu.memory_space<vmem>>, vector<8x128xf32>
    %14 = arith.mulf %12, %12 : vector<16x128xf32>
    %15 = vector.shape_cast %14 : vector<16x128xf32> to vector<2x8x128xf32>
    %cst_6 = arith.constant dense<0.000000e+00> : vector<8x128xf32>
    %16 = vector.multi_reduction <add>, %15, %cst_6 [0] : vector<2x8x128xf32> to vector<8x128xf32>
    %17 = arith.addf %13, %16 : vector<8x128xf32>
    %c0_7 = arith.constant 0 : index
    %c0_8 = arith.constant 0 : index
    %18 = vector.load %arg6[%c0_7, %c0_8] : memref<8x128xf32, #tpu.memory_space<vmem>>, vector<8x128xf32>
    tpu.vector_store %arg6[%c0_7, %c0_8], %17 {strides = array<i32>} : memref<8x128xf32, #tpu.memory_space<vmem>>, vector<8x128xf32>,
    %c0_9 = arith.constant 0 : index
    %c0_10 = arith.constant 0 : index
    %19 = vector.load %arg7[%c0_9, %c0_10] : memref<8x128xf32, #tpu.memory_space<vmem>>, vector<8x128xf32>
    %20 = arith.extui %9 : vector<16x128xi1> to vector<16x128xi32>
    %21 = arith.sitofp %20 : vector<16x128xi32> to vector<16x128xf32>
    %22 = vector.shape_cast %21 : vector<16x128xf32> to vector<2x8x128xf32>
    %cst_11 = arith.constant dense<0.000000e+00> : vector<8x128xf32>
    %23 = vector.multi_reduction <add>, %22, %cst_11 [0] : vector<2x8x128xf32> to vector<8x128xf32>
    %24 = arith.addf %19, %23 : vector<8x128xf32>
    %c0_12 = arith.constant 0 : index
    %c0_13 = arith.constant 0 : index
    %25 = vector.load %arg7[%c0_12, %c0_13] : memref<8x128xf32, #tpu.memory_space<vmem>>, vector<8x128xf32>
    tpu.vector_store %arg7[%c0_12, %c0_13], %24 {strides = array<i32>} : memref<8x128xf32, #tpu.memory_space<vmem>>, vector<8x128xf32>,
    %c0_i32_14 = arith.constant 0 : i32
    %26 = arith.cmpi eq, %arg1, %c0_i32_14 : i32
    %27 = arith.extui %26 : i1 to i32
    %c0_i32_15 = arith.constant 0 : i32
    %28 = arith.cmpi ne, %27, %c0_i32_15 : i32
    scf.if %28 {
      %c0_16 = arith.constant 0 : index
      %c0_17 = arith.constant 0 : index
      %29 = vector.load %arg6[%c0_16, %c0_17] : memref<8x128xf32, #tpu.memory_space<vmem>>, vector<8x128xf32>
      %30 = vector.shape_cast %29 : vector<8x128xf32> to vector<1x8x128xf32>
      %cst_18 = arith.constant dense<0.000000e+00> : vector<1xf32>
      %31 = vector.multi_reduction <add>, %30, %cst_18 [1, 2] : vector<1x8x128xf32> to vector<1xf32>
      %32 = vector.shape_cast %31 : vector<1xf32> to vector<1x1x1xf32>
      %33 = vector.extract %32[0, 0, 0] : f32 from vector<1x1x1xf32>
      %34 = vector.broadcast %33 : f32 to vector<1x1xf32>
      %c0_19 = arith.constant 0 : index
      %c0_20 = arith.constant 0 : index
      %35 = vector.load %arg4[%c0_19, %c0_20] : memref<1x1xf32, #tpu.memory_space<vmem>>, vector<1x1xf32>
      tpu.vector_store %arg4[%c0_19, %c0_20], %34 {strides = array<i32>} : memref<1x1xf32, #tpu.memory_space<vmem>>, vector<1x1xf32>,
      %c0_21 = arith.constant 0 : index
      %c0_22 = arith.constant 0 : index
      %36 = vector.load %arg7[%c0_21, %c0_22] : memref<8x128xf32, #tpu.memory_space<vmem>>, vector<8x128xf32>
      %37 = vector.shape_cast %36 : vector<8x128xf32> to vector<1x8x128xf32>
      %cst_23 = arith.constant dense<0.000000e+00> : vector<1xf32>
      %38 = vector.multi_reduction <add>, %37, %cst_23 [1, 2] : vector<1x8x128xf32> to vector<1xf32>
      %39 = vector.shape_cast %38 : vector<1xf32> to vector<1x1x1xf32>
      %40 = vector.extract %39[0, 0, 0] : f32 from vector<1x1x1xf32>
      %41 = vector.broadcast %40 : f32 to vector<1x1xf32>
      %c0_24 = arith.constant 0 : index
      %c0_25 = arith.constant 0 : index
      %42 = vector.load %arg5[%c0_24, %c0_25] : memref<1x1xf32, #tpu.memory_space<vmem>>, vector<1x1xf32>
      tpu.vector_store %arg5[%c0_24, %c0_25], %41 {strides = array<i32>} : memref<1x1xf32, #tpu.memory_space<vmem>>, vector<1x1xf32>,
    } else {
    }
    return
  }
  func.func @transform_0(%arg0: i32, %arg1: i32) -> (i32, i32) {
    %c1_i32 = arith.constant 1 : i32
    %0 = arith.muli %arg0, %c1_i32 : i32
    %1 = arith.addi %0, %arg1 : i32
    %c0_i32 = arith.constant 0 : i32
    %2 = arith.minsi %1, %c0_i32 : i32
    %c0_i32_0 = arith.constant 0 : i32
    %c0_i32_1 = arith.constant 0 : i32
    return %2, %c0_i32_0 : i32, i32
  }
  func.func @transform_1(%arg0: i32, %arg1: i32) -> (i32, i32) {
    %c1_i32 = arith.constant 1 : i32
    %0 = arith.muli %arg0, %c1_i32 : i32
    %1 = arith.addi %0, %arg1 : i32
    %c0_i32 = arith.constant 0 : i32
    %2 = arith.minsi %1, %c0_i32 : i32
    %c0_i32_0 = arith.constant 0 : i32
    %c0_i32_1 = arith.constant 0 : i32
    return %2, %c0_i32_0 : i32, i32
  }
  func.func @transform_2(%arg0: i32, %arg1: i32) -> (i32, i32) {
    %c0_i32 = arith.constant 0 : i32
    %c0_i32_0 = arith.constant 0 : i32
    return %arg0, %c0_i32 : i32, i32
  }
  func.func @transform_3(%arg0: i32, %arg1: i32) -> (i32, i32) {
    %c0_i32 = arith.constant 0 : i32
    %c0_i32_0 = arith.constant 0 : i32
    return %arg0, %c0_i32 : i32, i32
  }
}

</mosaic_0001>

<bundles_post_ra>
// kernel: tpu_custom_call.1
= control target key start
LH: loop header
LB: loop body
LE: loop exit
PB: predicated region body
PF: predicated region fallthrough
CT: control target
= control target key end

     0   :  { %9 = vsyncpa [#allocation5], 0  ;;  %s323_s0 = inlined_call_operand.hbm [shape: f32[16,128], index: 0, kind: input, shape index: {}]   ;;  %s324_s1 = inlined_call_operand.hbm [shape: f32[16,128], index: 1, kind: input, shape index: {}]   ;;  %s325_s2 = inlined_call_operand.hbm [shape: f32[1,1], index: 2, kind: output, shape index: {0}]   ;;  %s326_s3 = inlined_call_operand.hbm [shape: f32[1,1], index: 3, kind: output, shape index: {1}]  }
   0x1   :  { %10 = vsyncpa [#allocation8], 0 }
   0x2   :  { %11 = vsyncpa [#allocation6], 0 }
   0x3   :  { %12 = vsyncpa [#allocation11], 0  ;;  %s23_s14 = sshll.u32 %s323_s0, 4  ;;  %s283_s15 = smov [#allocation4]   ;;  %s24_s14 = int_to_ptr.hbm [resolvable:$true] %s23_s14 }
   0x4   :  { %s25_s16 = sshll.u32 %s283_s15, 4  ;;  %s42_s19 = sshll.u32 %s324_s1, 4  ;;  %s26_s16 = int_to_ptr.vmem [resolvable:$true] %s25_s16  ;;  %s43_s19 = int_to_ptr.hbm [resolvable:$true] %s42_s19 }
   0x5   :  { %s284_s20 = smov 128   ;;  %s285_s21 = smov 8  }
   0x6   :  { %31 = dma.hbm_to_vmem [thread:$0]  %s24_s14, 256, %s26_s16, [#allocation5], %s284_s20, %s284_s20, %s285_s21  }
   0x7   :  { %s286_s22 = smov [#allocation7]  }
   0x8   :  { %s44_s23 = sshll.u32 %s286_s22, 4  ;;  %s45_s23 = int_to_ptr.vmem [resolvable:$true] %s44_s23 }
   0x9   :  { %50 = dma.hbm_to_vmem [thread:$0]  %s43_s19, 256, %s45_s23, [#allocation8], %s284_s20, %s284_s20, %s285_s21  }
   0xa   :  { %275 = dma.done.wait [#allocation5], 256  }
   0xb   :  { %276 = vsyncadd [#allocation5], 4294967040 }
   0xc   :  { %277 = dma.done.wait [#allocation8], 256  }
   0xd   :  { %278 = vsyncadd [#allocation8], 4294967040  ;;  %v73_v0 = vld [vmem:[#allocation4] sm:$0xff]  ;;  %v74_v1 = vld [vmem:[#allocation4 + $0x8] sm:$0xff]  ;;  %vm287_vm2 = vmmov 1   ;;  %v288_v11 = vmov 0.0  }
   0xe   :  { %v75_v2 = vld [vmem:[#allocation7] sm:$0xff]  ;;  %v76_v3 = vld [vmem:[#allocation7 + $0x8] sm:$0xff]  ;;  %s289_s0 = smov [#allocation9]   ;;  %s134_s26 = sshll.u32 %s325_s2, 4  ;;  %vm113_vm5 = vcmask 0   ;;  %s135_s26 = int_to_ptr.hbm [resolvable:$true] %s134_s26 }
   0xf   :  { %vm77_vm0 = vcmp.ne.f32.partialorder %v75_v2, %v75_v2  ;;  %v81_v4 = vsub.f32 %v73_v0, %v75_v2  ;;  %vm78_vm1 = vcmp.ne.f32.partialorder %v76_v3, %v76_v3  ;;  %v82_v5 = vsub.f32 %v74_v1, %v76_v3  ;;  %s132_s1 = sshll.u32 %s289_s0, 4  ;;  %s290_s28 = smov [#allocation10]   ;;  %s133_s1 = int_to_ptr.vmem [resolvable:$true] %s132_s1 }
  0x10   :  { %vm79_vm3 = vmxor %vm77_vm0, %vm287_vm2  ;;  %s143_s29 = sshll.u32 %s290_s28, 4  ;;  %s145_s5 = sshll.u32 %s326_s3, 4  ;;  %s144_s29 = int_to_ptr.vmem [resolvable:$true] %s143_s29  ;;  %s146_s5 = int_to_ptr.hbm [resolvable:$true] %s145_s5 }
  0x11   :  { %vm80_vm4 = vmxor %vm78_vm1, %vm287_vm2  ;;  %v83_v6 = vsel %vm79_vm3, %v81_v4, 0.0  ;;  %v165_v12 = vsel %vm79_vm3, 1.0, %v288_v11 }
  0x12   :  { %v84_v7 = vsel %vm80_vm4, %v82_v5, 0.0  ;;  %v86_v8 = vmul.f32 %v83_v6, %v83_v6  ;;  %v166_v13 = vsel %vm80_vm4, 1.0, %v288_v11 }
  0x13   :  { %v87_v9 = vmul.f32 %v84_v7, %v84_v7  ;;  %v96_v14 = vadd.f32 %v166_v13, %v165_v12 }
  0x15   :  { %v88_v10 = vadd.f32 %v87_v9, %v86_v8 }
  0x17   :  { %103 = vadd.xlane.f32.xlu0 %v88_v10 }
  0x1f   :  { %116 = vadd.xlane.f32.xlu0 %v96_v14 }
  0x8a   :  { %v104_v15 = vpop.xlane.xlu0 %103 }
  0x8b   :  { %v105_v16 = vrot.slane %v104_v15, 4 }
  0x8d   :  { %v106_v17 = vadd.f32 %v105_v16, %v104_v15 }
  0x8f   :  { %v107_v18 = vrot.slane %v106_v17, 2 }
  0x91   :  { %v108_v19 = vadd.f32 %v107_v18, %v106_v17 }
  0x92   :  { %v117_v20 = vpop.xlane.xlu0 %116 }
  0x93   :  { %v118_v21 = vrot.slane %v117_v20, 4  ;;  %v109_v22 = vrot.slane %v108_v19, 1 }
  0x95   :  { %v119_v23 = vadd.f32 %v118_v21, %v117_v20  ;;  %v110_v24 = vadd.f32 %v109_v22, %v108_v19 }
  0x97   :  { %v120_v25 = vrot.slane %v119_v23, 2  ;;  %167 = vpush %v110_v24 }
  0x99   :  { %v121_v26 = vadd.f32 %v120_v25, %v119_v23 }
  0x9b   :  { %v122_v27 = vrot.slane %v121_v26, 1 }
  0x9d   :  { %v123_v28 = vadd.f32 %v122_v27, %v121_v26 }
  0x9f   :  { %169 = vpush %v123_v28 }
  0xc8   :  { %s168_s27 = spop %167 }
  0xc9   :  { %v112_v29 = vstv %s168_s27 }
  0xca   :  { %114 = vst.msk [vmem:[#allocation9] sm:$0x1] %vm113_vm5, %v112_v29 }
  0xcb   :  { %137 = dma.vmem_to_hbm [thread:$0]  %s133_s1, 16, %s135_s26, [#allocation6]  }
  0xd0   :  { %s170_s6 = spop %169 }
  0xd1   :  { %v125_v30 = vstv %s170_s6 }
  0xd2   :  { %126 = vst.msk [vmem:[#allocation10] sm:$0x1] %vm113_vm5, %v125_v30 }
  0xd3   :  { %148 = dma.vmem_to_hbm [thread:$0]  %s144_s29, 16, %s146_s5, [#allocation11]  }
  0xd4   :  { %279 = dma.done.wait [#allocation6], 16  }
  0xd5   :  { %280 = vsyncadd [#allocation6], 4294967280 }
  0xd6   :  { %281 = dma.done.wait [#allocation11], 16  }
  0xd7   :  { %282 = vsyncadd [#allocation11], 4294967280 }
  0xd8   :  { %157 = vsyncpa [#allocation5], 1 }
  0xd9   :  { %158 = vsyncpa [#allocation8], 1 }
  0xda   :  { %159 = vsyncpa [#allocation6], 1 }
  0xdb   :  { %160 = vsyncpa [#allocation11], 1 }

</bundles_post_ra>
